<compile_context>
chip_gen: v7x
topology: tpu7x:2x2x1
jax: 0.10.0
libtpu: 0.0.40
codegen_flags: <defaults>
</compile_context>

<pallas_src>
import math
import jax
import jax.numpy as jnp
from jax.experimental import pallas as pl
from jax.experimental.pallas import tpu as pltpu

_MIB = 1024 * 1024


# --------------------------------------------------------------------------- #
# Kernels
# --------------------------------------------------------------------------- #
def ffn_fused_kernel(x_ref, w1_ref, b1_ref, w2_ref, b2_ref, o_ref):
    """Single-reduction-step kernel: full d_ff resident, grid = (M // tm,).

    w1/w2/b1/b2 have constant index maps -> Pallas keeps them resident in VMEM
    and fetches them from HBM exactly once for the whole call.
    """
    h = jnp.dot(x_ref[...], w1_ref[...], preferred_element_type=jnp.float32)
    h = jnp.maximum(h + b1_ref[...].astype(jnp.float32), 0.0)
    # TODO(synk): training-mode dropout (inverted scaling + pltpu.prng_*) not
    # implemented; this kernel matches the module in eval() mode (identity).
    out = jnp.dot(h.astype(w2_ref.dtype), w2_ref[...],
                  preferred_element_type=jnp.float32)
    o_ref[...] = (out + b2_ref[...].astype(jnp.float32)).astype(o_ref.dtype)


def _split_step(x_ref, w1_ref, b1_ref, w2_ref, b2_ref, acc_ref, store_to=None):
    """One (token tile i, d_ff slice j) step of the split-reduction kernel.

    The d_ff axis is walked serpentine (reversed on odd i) so the last weight
    slice of token tile i is reused as the first slice of tile i+1.
    """
    i = pl.program_id(0)
    j = pl.program_id(1)
    nj = pl.num_programs(1)

    @pl.when(j == 0)
    def _init():
        # Fold linear_2's bias into the accumulator init (added exactly once).
        acc_ref[...] = jnp.broadcast_to(
            b2_ref[...].astype(jnp.float32), acc_ref.shape)

    # Effective d_ff slice index (matches the serpentine w1/w2 index_maps).
    j_eff = j + (i % 2) * (nj - 1 - 2 * j)
    # b1 is fully resident as a (nj, tf) block: one dynamic row slice, no DMA.
    b1_row = b1_ref[pl.ds(j_eff, 1), :].astype(jnp.float32)

    # linear_1 slice + bias + ReLU, all in f32 (MXU accumulates in f32).
    h = jnp.dot(x_ref[...], w1_ref[...], preferred_element_type=jnp.float32)
    h = jnp.maximum(h + b1_row, 0.0)
    # TODO(synk): training-mode dropout not implemented (eval() semantics).

    # Partial linear_2: accumulate into the resident f32 tile.
    acc_ref[...] += jnp.dot(h.astype(w2_ref.dtype), w2_ref[...],
                            preferred_element_type=jnp.float32)

    if store_to is not None:
        @pl.when(j == nj - 1)
        def _store():
            store_to[...] = acc_ref[...].astype(store_to.dtype)


def ffn_split_kernel(x_ref, w1_ref, b1_ref, w2_ref, b2_ref, o_ref, acc_ref):
    _split_step(x_ref, w1_ref, b1_ref, w2_ref, b2_ref, acc_ref, store_to=o_ref)


def ffn_split_kernel_f32out(x_ref, w1_ref, b1_ref, w2_ref, b2_ref, o_ref):
    # f32 output: accumulate directly in the resident output block (no scratch,
    # saves tm*d_model*4 bytes of VMEM and one full-tile copy).
    _split_step(x_ref, w1_ref, b1_ref, w2_ref, b2_ref, o_ref, store_to=None)


# --------------------------------------------------------------------------- #
# Wrapper
# --------------------------------------------------------------------------- #
def _round_up(a, b):
    return -(-a // b) * b


def _vmem_budget_bytes():
    """Generation-aware VMEM budget with headroom.

    v5e/v6e have 128 MiB physical VMEM -> use ~100 MiB; v7x has 64 MiB per
    TensorCore -> cap around 48-52 MiB, leaving room for the f32 h intermediate,
    DMA descriptors and Mosaic internal scratch.
    """
    cap = None
    try:
        cap = int(getattr(pltpu.get_tpu_info(), "vmem_capacity_bytes", 0)) or None
    except Exception:
        cap = None
    if cap is None:
        cap = 64 * _MIB                      # conservative default (v7x-sized)
    if cap <= 64 * _MIB:
        return min(int(cap * 0.75), 52 * _MIB)
    return min(int(cap * 0.80), 104 * _MIB)


def feed_forward_network(x, w1, b1, w2, b2, *, tm=None, tf=None,
                         compute_dtype=None):
    """x: [B, S, d_model] -> [B, S, d_model].

    Weights stored pre-transposed vs torch.nn.Linear:
      w1: [d_model, d_ff], b1: [d_ff], w2: [d_ff, d_model], b2: [d_model]

    compute_dtype: optional MXU dtype for x/w1/w2 (e.g. jnp.bfloat16). Bias add,
    ReLU and all accumulation stay in f32; the output keeps x's original dtype.
    """
    B, S, d_model = x.shape
    d_ff = w1.shape[1]
    out_dtype = x.dtype

    if compute_dtype is not None and jnp.dtype(compute_dtype) != x.dtype:
        x = x.astype(compute_dtype)
        w1 = w1.astype(compute_dtype)
        w2 = w2.astype(compute_dtype)

    M = B * S
    in_isz = x.dtype.itemsize
    w_isz = w1.dtype.itemsize
    out_isz = jnp.dtype(out_dtype).itemsize
    b_isz = b1.dtype.itemsize
    sub = 16 if in_isz == 2 else 8

    budget = _vmem_budget_bytes()

    # Rough per-call VMEM footprints (double-buffered inputs/outputs + f32
    # intermediates), used only to choose tiles that stay under `budget`.
    def fused_vmem(tm_):
        return (2 * tm_ * d_model * (in_isz + out_isz)        # x / out tiles
                + 2 * 2 * d_model * d_ff * w_isz              # resident w1 + w2
                + 2 * (d_ff + d_model) * b_isz                # biases
                + tm_ * d_ff * 4                              # f32 h intermediate
                + tm_ * d_model * 4)                          # f32 out before cast

    def split_vmem(tm_, tf_):
        return (2 * tm_ * d_model * (in_isz + out_isz)
                + 2 * 2 * d_model * tf_ * w_isz               # w1/w2 slices (dbl-buf)
                + 2 * (d_ff + d_model) * b_isz
                + tm_ * d_model * 4                           # f32 accumulator
                + tm_ * tf_ * 4)                              # f32 h intermediate

    # ---- token-tile candidates (sublane-aligned, prefer 512/256/128) --------
    m_cap = max(sub, _round_up(M, sub))
    if M >= 2 * sub:
        # keep >= 2 token tiles so the "parallel" axis can feed both v7x cores
        m_cap = min(m_cap, _round_up(-(-M // 2), sub))
    tm_cands = [t for t in (512, 256, 128, 64, 32, 16, 8)
                if t % sub == 0 and t <= m_cap]
    if m_cap not in tm_cands:
        tm_cands.append(m_cap)
    tm_cands = sorted(set(tm_cands), reverse=True)

    if tm is None or tf is None:
        auto_tm = auto_tf = None
        # 1) Full weight residency: tf = d_ff, weights fetched from HBM once.
        for t in tm_cands:
            if fused_vmem(t) <= budget:
                auto_tm, auto_tf = t, d_ff
                break
        # 2) Otherwise split d_ff; shrink tm before tf (tf is the MXU
        #    contraction depth; tm is the cheaper VMEM knob, esp. on v7x).
        if auto_tm is None:
            tf_cands = [c for c in range((min(d_ff, 2048) // 128) * 128, 127, -128)
                        if d_ff % c == 0] or [d_ff]
            for tf_c in tf_cands:
                for t in tm_cands:
                    if split_vmem(t, tf_c) <= budget:
                        auto_tm, auto_tf = t, tf_c
                        break
                if auto_tm is not None:
                    break
            if auto_tm is None:                  # last resort: smallest tiles
                auto_tm, auto_tf = tm_cands[-1], tf_cands[-1]
        tm = tm if tm is not None else auto_tm
        tf = tf if tf is not None else auto_tf

    tm = _round_up(int(tm), sub)
    tf = min(int(tf), d_ff)
    if tf < d_ff and (d_ff % tf != 0 or tf % 128 != 0):
        tf = d_ff                                # ragged/unaligned d_ff: single step
    use_fused = tf >= d_ff

    # ---- pad ragged token counts instead of asserting ------------------------
    M_pad = _round_up(M, tm)
    x2d = x.reshape(M, d_model)
    if M_pad != M:
        x2d = jnp.pad(x2d, ((0, M_pad - M), (0, 0)))
    grid_m = M_pad // tm

    vmem_limit = int(budget)
    weight_passes = 1 if use_fused else grid_m   # (serpentine saves a bit more)
    cost = pl.CostEstimate(
        flops=4 * M_pad * d_model * d_ff,
        transcendentals=0,
        bytes_accessed=int(M_pad * d_model * (in_isz + out_isz)
                           + weight_passes * (w1.size + w2.size) * w_isz
                           + b1.size * b_isz + b2.size * b_isz),
    )

    b2_2d = b2.reshape(1, d_model)

    if use_fused:
        out2d = pl.pallas_call(
            ffn_fused_kernel,
            out_shape=jax.ShapeDtypeStruct((M_pad, d_model), out_dtype),
            grid_spec=pltpu.PrefetchScalarGridSpec(
                num_scalar_prefetch=0,
                grid=(grid_m,),
                in_specs=[
                    pl.BlockSpec((tm, d_model), lambda i: (i, 0)),       # x tile
                    pl.BlockSpec((d_model, d_ff), lambda i: (0, 0)),     # w1 (resident)
                    pl.BlockSpec((1, d_ff), lambda i: (0, 0)),           # b1 (resident)
                    pl.BlockSpec((d_ff, d_model), lambda i: (0, 0)),     # w2 (resident)
                    pl.BlockSpec((1, d_model), lambda i: (0, 0)),        # b2 (resident)
                ],
                out_specs=pl.BlockSpec((tm, d_model), lambda i: (i, 0)),
            ),
            compiler_params=pltpu.CompilerParams(
                dimension_semantics=("parallel",),
                vmem_limit_bytes=vmem_limit),
            cost_estimate=cost,
        )(x2d, w1, b1.reshape(1, d_ff), w2, b2_2d)
    else:
        nj = d_ff // tf

        def serp(i, j):
            # serpentine d_ff walk: reuse the boundary weight slice across i
            return j + (i % 2) * (nj - 1 - 2 * j)

        f32_out = jnp.dtype(out_dtype) == jnp.dtype(jnp.float32)
        kernel = ffn_split_kernel_f32out if f32_out else ffn_split_kernel
        scratch = [] if f32_out else [pltpu.VMEM((tm, d_model), jnp.float32)]

        out2d = pl.pallas_call(
            kernel,
            out_shape=jax.ShapeDtypeStruct((M_pad, d_model), out_dtype),
            grid_spec=pltpu.PrefetchScalarGridSpec(
                num_scalar_prefetch=0,
                grid=(grid_m, nj),
                in_specs=[
                    pl.BlockSpec((tm, d_model), lambda i, j: (i, 0)),          # x tile
                    pl.BlockSpec((d_model, tf), lambda i, j: (0, serp(i, j))),  # w1 slice
                    pl.BlockSpec((nj, tf), lambda i, j: (0, 0)),               # b1 (resident)
                    pl.BlockSpec((tf, d_model), lambda i, j: (serp(i, j), 0)),  # w2 slice
                    pl.BlockSpec((1, d_model), lambda i, j: (0, 0)),           # b2 (resident)
                ],
                out_specs=pl.BlockSpec((tm, d_model), lambda i, j: (i, 0)),
                scratch_shapes=scratch,
            ),
            compiler_params=pltpu.CompilerParams(
                dimension_semantics=("parallel", "arbitrary"),
                vmem_limit_bytes=vmem_limit),
            cost_estimate=cost,
        )(x2d, w1, b1.reshape(nj, tf), w2, b2_2d)

    if M_pad != M:
        out2d = out2d[:M]
    return out2d.reshape(B, S, d_model)


# --------------------------------------------------------------------------- #
# Helpers / self-test
# --------------------------------------------------------------------------- #
def init_params(key, d_model, d_ff, dtype=jnp.float32):
    """Deterministic init mimicking torch.nn.Linear (uniform +/- 1/sqrt(fan_in)),
    weights stored pre-transposed: w1 [d_model, d_ff], w2 [d_ff, d_model]."""
    k1, k2, k3, k4 = jax.random.split(key, 4)
    bound1 = 1.0 / math.sqrt(d_model)
    bound2 = 1.0 / math.sqrt(d_ff)
    w1 = jax.random.uniform(k1, (d_model, d_ff), dtype, -bound1, bound1)
    b1 = jax.random.uniform(k2, (d_ff,), dtype, -bound1, bound1)
    w2 = jax.random.uniform(k3, (d_ff, d_model), dtype, -bound2, bound2)
    b2 = jax.random.uniform(k4, (d_model,), dtype, -bound2, bound2)
    return w1, b1, w2, b2


def _reference(x, w1, b1, w2, b2):
    hp = jax.lax.Precision.HIGHEST
    M = x.shape[0] * x.shape[1]
    xf = x.astype(jnp.float32).reshape(M, -1)
    h = jnp.maximum(jnp.dot(xf, w1.astype(jnp.float32), precision=hp) + b1, 0.0)
    out = jnp.dot(h, w2.astype(jnp.float32), precision=hp) + b2
    return out.reshape(x.shape[0], x.shape[1], -1)


if __name__ == "__main__":
    # Small but lane-dense shapes (d_model multiple of 128 -> unmasked stores).
    B, S, d_model, d_ff = 2, 16, 128, 512

    key = jax.random.PRNGKey(0)
    kx, kp = jax.random.split(key)
    x = jax.random.normal(kx, (B, S, d_model), jnp.float32)
    w1, b1, w2, b2 = init_params(kp, d_model, d_ff)
    ref = _reference(x, w1, b1, w2, b2)

    # 1) Auto-tiled path: weights fully VMEM-resident (tf = d_ff, fused kernel).
    out = jax.block_until_ready(feed_forward_network(x, w1, b1, w2, b2))
    assert jnp.allclose(out, ref, atol=1e-2, rtol=1e-2), "fused path mismatch"

    # 2) Forced split path: exercises the f32 accumulation into o_ref, resident
    #    b1 row slice and serpentine d_ff walk (grid = (2, 2)).
    out = jax.block_until_ready(
        feed_forward_network(x, w1, b1, w2, b2, tm=16, tf=256))
    assert jnp.allclose(out, ref, atol=1e-2, rtol=1e-2), "split path mismatch"

    # 3) Ragged token count: exercises zero-padding (M = 18 padded to 32).
    xr = x[:, :9, :]
    out = jax.block_until_ready(feed_forward_network(xr, w1, b1, w2, b2))
    assert jnp.allclose(out, _reference(xr, w1, b1, w2, b2),
                        atol=1e-2, rtol=1e-2), "ragged path mismatch"

    # 4) bf16 compute path (MXU-rate matmuls, f32 accumulation) — deliberate
    #    precision trade, output stays f32.
    out = jax.block_until_ready(
        feed_forward_network(x, w1, b1, w2, b2, compute_dtype=jnp.bfloat16))
    assert jnp.allclose(out, ref, atol=5e-2, rtol=5e-2), "bf16 path mismatch"

    # 5) bf16 in/out, forced split: exercises the scratch-accumulator variant.
    out = jax.block_until_ready(
        feed_forward_network(x.astype(jnp.bfloat16), w1.astype(jnp.bfloat16),
                             b1, w2.astype(jnp.bfloat16), b2, tm=16, tf=256))
    assert jnp.allclose(out.astype(jnp.float32), ref,
                        atol=5e-2, rtol=5e-2), "bf16 split path mismatch"

    print("KERNEL_OK")
</pallas_src>

<mosaic_0001>
module attributes {stable_mosaic.version = 11 : i64} {
  func.func @ffn_fused_kernel(%arg0: i32, %arg1: memref<16x128xf32, #tpu.memory_space<vmem>>, %arg2: memref<128x512xf32, #tpu.memory_space<vmem>>, %arg3: memref<1x512xf32, #tpu.memory_space<vmem>>, %arg4: memref<512x128xf32, #tpu.memory_space<vmem>>, %arg5: memref<1x128xf32, #tpu.memory_space<vmem>>, %arg6: memref<16x128xf32, #tpu.memory_space<vmem>>) attributes {dimension_semantics = [#tpu.dimension_semantics<parallel>], iteration_bounds = array<i64: 2>, scalar_prefetch = 0 : i64, scratch_operands = 0 : i64, tpu.core_type = #tpu.core_type<tc>, window_params = [{transform_indices = @transform_0, window_bounds = array<i64: 16, 128>}, {pipeline_mode = #tpu.pipeline_mode<synchronous>, transform_indices = @transform_1, window_bounds = array<i64: 128, 512>}, {pipeline_mode = #tpu.pipeline_mode<synchronous>, transform_indices = @transform_2, window_bounds = array<i64: 1, 512>}, {pipeline_mode = #tpu.pipeline_mode<synchronous>, transform_indices = @transform_3, window_bounds = array<i64: 512, 128>}, {pipeline_mode = #tpu.pipeline_mode<synchronous>, transform_indices = @transform_4, window_bounds = array<i64: 1, 128>}, {transform_indices = @transform_5, window_bounds = array<i64: 16, 128>}]} {
    %c0 = arith.constant 0 : index
    %c0_0 = arith.constant 0 : index
    %0 = vector.load %arg1[%c0, %c0_0] : memref<16x128xf32, #tpu.memory_space<vmem>>, vector<16x128xf32>
    %c0_1 = arith.constant 0 : index
    %c0_2 = arith.constant 0 : index
    %1 = vector.load %arg2[%c0_1, %c0_2] : memref<128x512xf32, #tpu.memory_space<vmem>>, vector<128x512xf32>
    %cst = arith.constant dense<0.000000e+00> : vector<16x512xf32>
    %2 = tpu.matmul %0, %1, %cst {dimension_numbers = #tpu.dot_dimension_numbers<[1], [0], [0], [1], [0, 0, 1, 1], [], []>} : vector<16x128xf32>, vector<128x512xf32>, vector<16x512xf32> -> vector<16x512xf32>
    %c0_3 = arith.constant 0 : index
    %c0_4 = arith.constant 0 : index
    %3 = vector.load %arg3[%c0_3, %c0_4] : memref<1x512xf32, #tpu.memory_space<vmem>>, vector<1x512xf32>
    %4 = vector.broadcast %3 : vector<1x512xf32> to vector<16x512xf32>
    %5 = arith.addf %2, %4 : vector<16x512xf32>
    %cst_5 = arith.constant 0.000000e+00 : f32
    %6 = vector.broadcast %cst_5 : f32 to vector<16x512xf32>
    %7 = arith.maximumf %5, %6 : vector<16x512xf32>
    %c0_6 = arith.constant 0 : index
    %c0_7 = arith.constant 0 : index
    %8 = vector.load %arg4[%c0_6, %c0_7] : memref<512x128xf32, #tpu.memory_space<vmem>>, vector<512x128xf32>
    %cst_8 = arith.constant dense<0.000000e+00> : vector<16x128xf32>
    %9 = tpu.matmul %7, %8, %cst_8 {dimension_numbers = #tpu.dot_dimension_numbers<[1], [0], [0], [1], [0, 0, 1, 1], [], []>} : vector<16x512xf32>, vector<512x128xf32>, vector<16x128xf32> -> vector<16x128xf32>
    %c0_9 = arith.constant 0 : index
    %c0_10 = arith.constant 0 : index
    %10 = vector.load %arg5[%c0_9, %c0_10] : memref<1x128xf32, #tpu.memory_space<vmem>>, vector<1x128xf32>
    %11 = vector.broadcast %10 : vector<1x128xf32> to vector<16x128xf32>
    %12 = arith.addf %9, %11 : vector<16x128xf32>
    %c0_11 = arith.constant 0 : index
    %c0_12 = arith.constant 0 : index
    %13 = vector.load %arg6[%c0_11, %c0_12] : memref<16x128xf32, #tpu.memory_space<vmem>>, vector<16x128xf32>
    tpu.vector_store %arg6[%c0_11, %c0_12], %12 {strides = array<i32>} : memref<16x128xf32, #tpu.memory_space<vmem>>, vector<16x128xf32>,
    return
  }
  func.func @transform_0(%arg0: i32) -> (i32, i32) {
    %c0_i32 = arith.constant 0 : i32
    %c0_i32_0 = arith.constant 0 : i32
    return %arg0, %c0_i32 : i32, i32
  }
  func.func @transform_1(%arg0: i32) -> (i32, i32) {
    %c0_i32 = arith.constant 0 : i32
    %c0_i32_0 = arith.constant 0 : i32
    %c0_i32_1 = arith.constant 0 : i32
    return %c0_i32, %c0_i32_0 : i32, i32
  }
  func.func @transform_2(%arg0: i32) -> (i32, i32) {
    %c0_i32 = arith.constant 0 : i32
    %c0_i32_0 = arith.constant 0 : i32
    %c0_i32_1 = arith.constant 0 : i32
    return %c0_i32, %c0_i32_0 : i32, i32
  }
  func.func @transform_3(%arg0: i32) -> (i32, i32) {
    %c0_i32 = arith.constant 0 : i32
    %c0_i32_0 = arith.constant 0 : i32
    %c0_i32_1 = arith.constant 0 : i32
    return %c0_i32, %c0_i32_0 : i32, i32
  }
  func.func @transform_4(%arg0: i32) -> (i32, i32) {
    %c0_i32 = arith.constant 0 : i32
    %c0_i32_0 = arith.constant 0 : i32
    %c0_i32_1 = arith.constant 0 : i32
    return %c0_i32, %c0_i32_0 : i32, i32
  }
  func.func @transform_5(%arg0: i32) -> (i32, i32) {
    %c0_i32 = arith.constant 0 : i32
    %c0_i32_0 = arith.constant 0 : i32
    return %arg0, %c0_i32 : i32, i32
  }
}

</mosaic_0001>

<bundles_post_ra>
// kernel: tpu_custom_call.1
= control target key start
LH: loop header
LB: loop body
LE: loop exit
PB: predicated region body
PF: predicated region fallthrough
CT: control target
= control target key end

     0   :  { %10 = vsyncpa [#allocation3], 0  ;;  %s1609_s0 = inlined_call_operand.hbm [shape: f32[32,128], index: 0, kind: input, shape index: {}]   ;;  %s1610_s1 = inlined_call_operand.hbm [shape: f32[128,512], index: 1, kind: input, shape index: {}]   ;;  %s1611_s2 = inlined_call_operand.vmem [shape: f32[1,512], index: 2, kind: input, shape index: {}]   ;;  %s1612_s3 = inlined_call_operand.hbm [shape: f32[512,128], index: 3, kind: input, shape index: {}]   ;;  %s1613_s4 = inlined_call_operand.vmem [shape: f32[1,128], index: 4, kind: input, shape index: {}]   ;;  %s1614_s5 = inlined_call_operand.hbm [shape: f32[32,128], index: 5, kind: output, shape index: {}]  }
   0x1   :  { %12 = vsyncpa [#allocation3 + $0x1], 0 }
   0x2   :  { %13 = vsyncpa [#allocation6], 0 }
   0x3   :  { %14 = vsyncpa [#allocation4], 0 }
   0x4   :  { %16 = vsyncpa [#allocation4 + $0x1], 0  ;;  %s1351_s18 = smov 0   ;;  %s1353_s19 = smov 0  }
   0x5   :  { %s1355_s20 = smov 0   ;;  %s1357_s21 = smov 0  }
   0x6 LB: > { %s1372_s22 = sadd.s32 4294967295, %s1308_s21   ;;  %s853_s23 = sadd.s32 4294967294, %s1308_s21   ;;  %s1308_s21 = sphi %s1357_s21, %s1634_s21   ;;  %s1304_s20 = sphi %s1355_s20, %s1633_s20   ;;  %s1300_s19 = sphi %s1353_s19, %s1632_s19   ;;  %s1296_s18 = sphi %s1351_s18, %s1631_s18  }
   0x7   : > { %p42_p0 = scmp.ne.s32.totalorder %s1300_s19, %s1296_s18  ;;  %p1615_p1 = scmp.eq.s32.totalorder %s1372_s22, 0 }
   0x8   : > { %p156_p3 = scmp.eq.s32.totalorder %s853_s23, 1  ;;  %p854_p5 = scmp.ge.s32.totalorder %s1308_s21, 1 }
   0x9   : > { %p1381_p4 = por %p1615_p1, %p42_p0  ;;  %p163_p7 = scmp.lt.s32.totalorder %s1308_s21, 3 }
   0xa   : > { %p1386_p6 = por %p156_p3, %p42_p0  ;;  %s1310_s27 = smov [#allocation5]  }
   0xb   : > { %s1618_s24 = scalar_select %p1381_p4, 1, 0 }
   0xc   : > { %s1619_s25 = scalar_select %p1386_p6, 1, 0 }
   0xd   : > { %p1391_p8 = pnand %p854_p5, %p163_p7  ;;  %s175_s28 = sshll.u32 %s1310_s27, 4  ;;  %s1395_s28 = int_to_ptr.vmem [resolvable:$true] %s175_s28 }
   0xe   : > { %s1311_s30 = smov [#allocation7]   ;;  %s1152_s9 = scalar_lea.hbm %s1610_s1, 8192 }
   0xf   : > { %p1090_p9 = pneg %p1391_p8  ;;  %s191_s6 = sshll.u32 %s1311_s30, 4  ;;  %s1406_s6 = int_to_ptr.vmem [resolvable:$true] %s191_s6 }
  0x10   : > { %p1153_p12 = scmp.ne.s32.totalorder %s1610_s1, %s1152_s9  ;;  %p1159_p5 = scmp.lt.u32.totalorder %s1152_s9, %s1610_s1 }
  0x11   : > { %p1402_p11 = pnand %p1090_p9, %p1615_p1 }
  0x13   : > { %p1154_p13 = pneg %p1402_p11 }
  0x15   : > { %p1155_p0 = pnand %p1154_p13, %p1153_p12 }
  0x17   : > { %p1156_p3 = pneg %p1155_p0 }
  0x19   : > { %p1161_p7 = pnand %p1159_p5, %p1156_p3 }
  0x1b   : > { %1164 = shalt.err (!%p1161_p7)
}
  0x1c   : > { %s1165_s14 = scalar_lea.vmem %s1395_s28, 8192  ;;  %p1173_p2 = scmp.lt.s32.totalorder %s1395_s28, %s1395_s28 }
  0x1d   : > { %p1166_p9 = scmp.ne.s32.totalorder %s1395_s28, %s1165_s14  ;;  %p1174_p12 = scmp.lt.s32.totalorder %s1165_s14, %s1165_s14 }
  0x1f   : > { %p1168_p10 = pnand %p1166_p9, %p1154_p13  ;;  %p1175_p0 = por %p1174_p12, %p1173_p2 }
  0x21   : > { %p1169_p1 = pneg %p1168_p10 }
  0x23   : > { %p1176_p6 = pnand %p1175_p0, %p1169_p1 }
  0x25   : > { %1179 = shalt.err (!%p1176_p6)
}
  0x26   : > { %s1312_s15 = smov 512   ;;  %s1313_s16 = smov 32  }
  0x27   : > { %1093 = dma.hbm_to_vmem [thread:$0]  (!%p1402_p11), %s1610_s1, 8192, %s1395_s28, [#allocation6], %s1312_s15, %s1312_s15, %s1313_s16  }
  0x28   : > { %s1180_s7 = scalar_lea.hbm %s1612_s3, 8192 }
  0x29   : > { %p1181_p2 = scmp.ne.s32.totalorder %s1612_s3, %s1180_s7  ;;  %p1187_p10 = scmp.lt.u32.totalorder %s1180_s7, %s1612_s3 }
  0x2b   : > { %p1183_p1 = pnand %p1181_p2, %p1154_p13 }
  0x2d   : > { %p1184_p6 = pneg %p1183_p1 }
  0x2f   : > { %p1189_p3 = pnand %p1187_p10, %p1184_p6 }
  0x31   : > { %1192 = shalt.err (!%p1189_p3)
}
  0x32   : > { %s1193_s28 = scalar_lea.vmem %s1406_s6, 8192  ;;  %p1201_p12 = scmp.lt.s32.totalorder %s1406_s6, %s1406_s6 }
  0x33   : > { %p1194_p5 = scmp.ne.s32.totalorder %s1406_s6, %s1193_s28  ;;  %p1202_p0 = scmp.lt.s32.totalorder %s1193_s28, %s1193_s28 }
  0x35   : > { %p1196_p7 = pnand %p1194_p5, %p1154_p13  ;;  %p1203_p2 = por %p1202_p0, %p1201_p12 }
  0x37   : > { %p1197_p9 = pneg %p1196_p7 }
  0x39   : > { %p1204_p1 = pnand %p1203_p2, %p1197_p9 }
  0x3b   : > { %1207 = shalt.err (!%p1204_p1)
}
  0x3c   : > { %s1314_s12 = smov 128   ;;  %s1315_s13 = smov 8  }
  0x3d   : > { %1096 = dma.hbm_to_vmem [thread:$0]  (!%p1402_p11), %s1612_s3, 8192, %s1406_s6, [#allocation6], %s1314_s12, %s1314_s12, %s1315_s13  }
  0x3e   : > { %s1464_s16 = sadd.s32 1, %s1308_s21   ;;  %s29_s23 = sadd.s32 1, %s1304_s20 }
  0x3f   : > { %s26_s17 = ssub.s32 %s1308_s21, %s1464_s16  ;;  %p36_p6 = scmp.ne.s32.totalorder %s1304_s20, %s1300_s19 }
  0x40   : > { %p27_p13 = scmp.eq.s32.totalorder %s26_s17, 0  ;;  %p37_p10 = scmp.eq.s32.totalorder %s1308_s21, 0 }
  0x41   : > { %p1622_p5 = scmp.eq.s32.totalorder %s1372_s22, 1  ;;  %p1107_p9 = scmp.lt.s32.totalorder %s1308_s21, 2 }
  0x42   : > { %s1473_s27 = scalar_select %p27_p13, %s1304_s20, %s29_s23  }
  0x43   : > { %p38_p3 = por %p37_p10, %p36_p6  ;;  %p1477_p7 = por %p1622_p5, %p36_p6 }
  0x44   : > { %s208_s30 = sand.u32 1, %s1304_s20   ;;  %s872_s6 = sshll.u32 %s1308_s21, 8 }
  0x45   : > { %s1623_s29 = scalar_select %p1477_p7, 1, 0 }
  0x46   : > { %s858_s7 = sshll.u32 %s208_s30, 4  ;;  %s1487_s10 = scalar_lea.hbm %s1609_s0, %s872_s6 }
  0x47   : > { %s212_s11 = scalar_lea.vmem [#allocation2], %s858_s7  ;;  %p1491_p11 = pnand %p1107_p9, %p38_p3 }
  0x48   : > { %s219_s28 = sshll.u32 %s212_s11, 4  ;;  %s1495_s15 = scalar_lea.sflag [#allocation3], %s208_s30  ;;  %s1489_s28 = int_to_ptr.vmem [resolvable:$true] %s219_s28 }
  0x49   : > { %s1208_s17 = scalar_lea.hbm %s1487_s10, 256  ;;  %p1210_p0 = pneg %p1491_p11 }
  0x4a   : > { %p1209_p12 = scmp.ne.s32.totalorder %s1487_s10, %s1208_s17  ;;  %s1213_s6 = scalar_lea.hbm %s1609_s0, 512 }
  0x4b   : > { %p1214_p13 = scmp.lt.u32.totalorder %s1487_s10, %s1609_s0  ;;  %p1215_p6 = scmp.lt.u32.totalorder %s1213_s6, %s1208_s17 }
  0x4c   : > { %p1211_p2 = pnand %p1210_p0, %p1209_p12  ;;  %p1217_p3 = scmp.lt.u32.totalorder %s1208_s17, %s1487_s10 }
  0x4d   : > { %p1216_p10 = por %p1215_p6, %p1214_p13 }
  0x4e   : > { %p1212_p1 = pneg %p1211_p2 }
  0x4f   : > { %p1218_p5 = por %p1217_p3, %p1216_p10 }
  0x51   : > { %p1219_p9 = pnand %p1218_p5, %p1212_p1 }
  0x53   : > { %1222 = shalt.err (!%p1219_p9)
}
  0x54   : > { %s1223_s30 = scalar_lea.vmem %s1489_s28, 256  ;;  %s1316_s11 = smov [#allocation2]  }
  0x55   : > { %p1224_p12 = scmp.ne.s32.totalorder %s1489_s28, %s1223_s30  ;;  %s1228_s23 = sshll.u32 %s1316_s11, 4  ;;  %s1229_s23 = int_to_ptr.vmem [resolvable:$false] %s1228_s23 }
  0x56   : > { %s1230_s7 = scalar_lea.vmem %s1229_s23, 512  ;;  %p1231_p4 = scmp.lt.s32.totalorder %s1489_s28, %s1229_s23 }
  0x57   : > { %p1226_p2 = pnand %p1224_p12, %p1210_p0  ;;  %p1232_p13 = scmp.lt.s32.totalorder %s1230_s7, %s1223_s30 }
  0x59   : > { %p1227_p7 = pneg %p1226_p2  ;;  %p1233_p6 = por %p1232_p13, %p1231_p4 }
  0x5b   : > { %p1234_p10 = pnand %p1233_p6, %p1227_p7 }
  0x5d   : > { %1237 = shalt.err (!%p1234_p10)
}
  0x5e   : > { %1100 = dma.hbm_to_vmem [thread:$0]  (!%p1491_p11), %s1487_s10, 256, %s1489_s28, %s1495_s15, %s1314_s12, %s1314_s12, %s1315_s13  }
  0x5f   : > { %231 = sbr.rel (%p1391_p8) target bundleno = 598 (0x256), region = 40  ;;  %s1529_s17 = sand.u32 (!%p1391_p8), 1, %s1300_s19  }
  0x60   : > { %s862_s6 = sshll.u32 (!%p1391_p8), %s1529_s17, 4  ;;  %s234_s8 = scalar_lea.sflag (!%p1391_p8), [#allocation3], %s1529_s17 }
  0x61   : > { %s1535_s14 = scalar_lea.vmem (!%p1391_p8), [#allocation2], %s862_s6  ;;  %p1625_p4 = scmp.ne.s32.totalorder (!%p1391_p8), %s1618_s24, 0 }
  0x66   : > { %1283 = dma.done.wait (%p1625_p4), %s234_s8, 256  }
  0x67   : > { %1285 = vsyncadd (%p1625_p4), %s234_s8, 4294967040  ;;  %p1626_p7 = scmp.eq.s32.totalorder %s1372_s22, 0 }
  0x69   : > { %1287 = dma.done.wait (%p1626_p7), [#allocation6], 16384   ;;  %p1627_p8 = pmov %p1626_p7 }
  0x6a   : > { %v1317_v0 = vmov 0.0   ;;  %v277_v1 = vld [vmem:[#allocation5 + $0x8] sm:$0xff]  ;;  %v279_v3 = vld [vmem:[#allocation5 + $0x18] sm:$0xff]  ;;  %v276_v6 = vld [vmem:[#allocation5] sm:$0xff]  ;;  %s271_s10 = scalar_lea.vmem [#allocation8], %s862_s6  ;;  %s873_s15 = sshll.u32 %s1372_s22, 8 }
  0x6b   : > { %1289 = vsyncadd (%p1627_p8), [#allocation6], 4294950912  ;;  %426 = vmatprep.mubr.f32.mxu0 %v1317_v0  ;;  %503 = vmatprep.mubr.f32.mxu1 %v1317_v0  ;;  %v281_v2 = vld [vmem:[#allocation5 + $0x28] sm:$0xff]  ;;  %v283_v5 = vld [vmem:[#allocation5 + $0x38] sm:$0xff]  ;;  %s761_s28 = sshll.u32 %s271_s10, 4  ;;  %s1565_s11 = scalar_lea.hbm %s1614_s5, %s873_s15  ;;  %s1560_s28 = int_to_ptr.vmem [resolvable:$true] %s761_s28 }
  0x6c   : > { %v950_v4 = vpack.c.bf16 %v281_v2, %v277_v1  ;;  %v280_v7 = vld [vmem:[#allocation5 + $0x20] sm:$0xff]  ;;  %v982_v8 = vpack.c.bf16 %v283_v5, %v279_v3  ;;  %v278_v10 = vld [vmem:[#allocation5 + $0x10] sm:$0xff]  ;;  %v285_v12 = vld [vmem:[#allocation5 + $0x48] sm:$0xff]  ;;  %s748_s23 = scalar_lea.sflag [#allocation4], %s1529_s17  ;;  %s1238_s7 = scalar_lea.vmem %s1560_s28, 256 }
  0x6d   : > { %v952_v9 = vpack.c.bf16 %v280_v7, %v276_v6  ;;  %v282_v11 = vld [vmem:[#allocation5 + $0x30] sm:$0xff]  ;;  %v289_v14 = vld [vmem:[#allocation5 + $0x68] sm:$0xff]  ;;  %v287_v15 = vld [vmem:[#allocation5 + $0x58] sm:$0xff]  ;;  %p1239_p11 = scmp.ne.s32.totalorder %s1560_s28, %s1238_s7  ;;  %p1628_p0 = scmp.ne.s32.totalorder %s1623_s29, 0 }
  0x6e   : > { %951 = vmatprep.subr.bf16.mxu0 %v950_v4  ;;  %v984_v13 = vpack.c.bf16 %v282_v11, %v278_v10  ;;  %v291_v16 = vld [vmem:[#allocation5 + $0x78] sm:$0xff]  ;;  %983 = vmatprep.subr.bf16.mxu1 %v982_v8  ;;  %v954_v17 = vpack.c.bf16 %v289_v14, %v285_v12  ;;  %v284_v19 = vld [vmem:[#allocation5 + $0x40] sm:$0xff]  ;;  %v286_v21 = vld [vmem:[#allocation5 + $0x50] sm:$0xff]  ;;  %s1318_s22 = smov [#allocation8]  }
  0x6f   : > { %953 = vmatpush1.bf16.msra.mxu0 %v952_v9  ;;  %v986_v18 = vpack.c.bf16 %v291_v16, %v287_v15  ;;  %v288_v20 = vld [vmem:[#allocation5 + $0x60] sm:$0xff]  ;;  %v290_v23 = vld [vmem:[#allocation5 + $0x70] sm:$0xff]  ;;  %v293_v24 = vld [vmem:[#allocation5 + $0x88] sm:$0xff]  ;;  %p1240_p1 = pnand %p1239_p11, %p1628_p0  ;;  %s1242_s6 = sshll.u32 %s1318_s22, 4  ;;  %s1243_s6 = int_to_ptr.vmem [resolvable:$false] %s1242_s6 }
  0x70   : > { %985 = vmatpush1.bf16.msra.mxu1 %v984_v13  ;;  %v956_v22 = vpack.c.bf16 %v288_v20, %v284_v19  ;;  %v297_v25 = vld [vmem:[#allocation5 + $0xa8] sm:$0xff]  ;;  %955 = vmatprep.subr.bf16.mxu0 %v954_v17  ;;  %v988_v26 = vpack.c.bf16 %v290_v23, %v286_v21  ;;  %v295_v28 = vld [vmem:[#allocation5 + $0x98] sm:$0xff]  ;;  %v292_v30 = vld [vmem:[#allocation5 + $0x80] sm:$0xff]  ;;  %s1244_s8 = scalar_lea.vmem %s1243_s6, 512  ;;  %p1245_p5 = scmp.lt.s32.totalorder %s1560_s28, %s1243_s6 }
  0x71   : > { %987 = vmatprep.subr.bf16.mxu1 %v986_v18  ;;  %v958_v27 = vpack.c.bf16 %v297_v25, %v293_v24  ;;  %v299_v29 = vld [vmem:[#allocation5 + $0xb8] sm:$0xff]  ;;  %v296_v32 = vld [vmem:[#allocation5 + $0xa0] sm:$0xff]  ;;  %v294_v33 = vld [vmem:[#allocation5 + $0x90] sm:$0xff]  ;;  %p1241_p3 = pneg %p1240_p1  ;;  %p1246_p9 = scmp.lt.s32.totalorder %s1244_s8, %s1238_s7 }
  0x72   : > { %v990_v31 = vpack.c.bf16 %v299_v29, %v295_v28  ;;  %v298_v34 = vld [vmem:[#allocation5 + $0xb0] sm:$0xff]  ;;  %v960_v35 = vpack.c.bf16 %v296_v32, %v292_v30  ;;  %v301_v36 = vld [vmem:[#allocation5 + $0xc8] sm:$0xff]  ;;  %v303_v38 = vld [vmem:[#allocation5 + $0xd8] sm:$0xff] }
  0x73   : > { %957 = vmatpush1.bf16.msra.mxu0 %v956_v22  ;;  %v305_v37 = vld [vmem:[#allocation5 + $0xe8] sm:$0xff]  ;;  %v992_v39 = vpack.c.bf16 %v298_v34, %v294_v33  ;;  %v307_v41 = vld [vmem:[#allocation5 + $0xf8] sm:$0xff]  ;;  %v300_v42 = vld [vmem:[#allocation5 + $0xc0] sm:$0xff]  ;;  %p1247_p12 = por %p1246_p9, %p1245_p5 }
  0x74   : > { %989 = vmatpush1.bf16.msra.mxu1 %v988_v26  ;;  %959 = vmatprep.subr.bf16.mxu0 %v958_v27  ;;  %v962_v40 = vpack.c.bf16 %v305_v37, %v301_v36  ;;  %v304_v43 = vld [vmem:[#allocation5 + $0xe0] sm:$0xff]  ;;  %v994_v44 = vpack.c.bf16 %v307_v41, %v303_v38  ;;  %v302_v45 = vld [vmem:[#allocation5 + $0xd0] sm:$0xff]  ;;  %v309_v47 = vld [vmem:[#allocation5 + $0x108] sm:$0xff] }
  0x75   : > { %991 = vmatprep.subr.bf16.mxu1 %v990_v31  ;;  %v306_v46 = vld [vmem:[#allocation5 + $0xf0] sm:$0xff]  ;;  %v313_v48 = vld [vmem:[#allocation5 + $0x128] sm:$0xff]  ;;  %v311_v49 = vld [vmem:[#allocation5 + $0x118] sm:$0xff]  ;;  %v964_v51 = vpack.c.bf16 %v304_v43, %v300_v42  ;;  %p1248_p2 = pnand %p1247_p12, %p1241_p3 }
  0x76   : > { %v315_v50 = vld [vmem:[#allocation5 + $0x138] sm:$0xff]  ;;  %v996_v52 = vpack.c.bf16 %v306_v46, %v302_v45  ;;  %v966_v53 = vpack.c.bf16 %v313_v48, %v309_v47  ;;  %v308_v54 = vld [vmem:[#allocation5 + $0x100] sm:$0xff]  ;;  %v310_v56 = vld [vmem:[#allocation5 + $0x110] sm:$0xff] }
  0x77   : > { %961 = vmatpush1.bf16.msra.mxu0 %v960_v35  ;;  %v312_v55 = vld [vmem:[#allocation5 + $0x120] sm:$0xff]  ;;  %v998_v57 = vpack.c.bf16 %v315_v50, %v311_v49  ;;  %v314_v58 = vld [vmem:[#allocation5 + $0x130] sm:$0xff]  ;;  %v317_v59 = vld [vmem:[#allocation5 + $0x148] sm:$0xff] }
  0x78   : > { %993 = vmatpush1.bf16.msra.mxu1 %v992_v39  ;;  %963 = vmatprep.subr.bf16.mxu0 %v962_v40  ;;  %v321_v60 = vld [vmem:[#allocation5 + $0x168] sm:$0xff]  ;;  %v319_v61 = vld [vmem:[#allocation5 + $0x158] sm:$0xff]  ;;  %v968_v63 = vpack.c.bf16 %v312_v55, %v308_v54  ;;  %v1000_v1 = vpack.c.bf16 %v314_v58, %v310_v56  ;;  %v316_v3 = vld [vmem:[#allocation5 + $0x140] sm:$0xff] }
  0x79   : > { %995 = vmatprep.subr.bf16.mxu1 %v994_v44  ;;  %v323_v62 = vld [vmem:[#allocation5 + $0x178] sm:$0xff]  ;;  %v970_v2 = vpack.c.bf16 %v321_v60, %v317_v59  ;;  %v320_v4 = vld [vmem:[#allocation5 + $0x160] sm:$0xff]  ;;  %v318_v5 = vld [vmem:[#allocation5 + $0x150] sm:$0xff] }
  0x7a   : > { %v1002_v6 = vpack.c.bf16 %v323_v62, %v319_v61  ;;  %v322_v7 = vld [vmem:[#allocation5 + $0x170] sm:$0xff]  ;;  %v325_v8 = vld [vmem:[#allocation5 + $0x188] sm:$0xff]  ;;  %v327_v10 = vld [vmem:[#allocation5 + $0x198] sm:$0xff]  ;;  %v972_v12 = vpack.c.bf16 %v320_v4, %v316_v3 }
  0x7b   : > { %965 = vmatpush1.bf16.msra.mxu0 %v964_v51  ;;  %v329_v9 = vld [vmem:[#allocation5 + $0x1a8] sm:$0xff]  ;;  %v331_v11 = vld [vmem:[#allocation5 + $0x1b8] sm:$0xff]  ;;  %v1004_v13 = vpack.c.bf16 %v322_v7, %v318_v5  ;;  %v324_v15 = vld [vmem:[#allocation5 + $0x180] sm:$0xff] }
  0x7c   : > { %997 = vmatpush1.bf16.msra.mxu1 %v996_v52  ;;  %967 = vmatprep.subr.bf16.mxu0 %v966_v53  ;;  %v974_v14 = vpack.c.bf16 %v329_v9, %v325_v8  ;;  %v328_v16 = vld [vmem:[#allocation5 + $0x1a0] sm:$0xff]  ;;  %v326_v17 = vld [vmem:[#allocation5 + $0x190] sm:$0xff]  ;;  %v1006_v18 = vpack.c.bf16 %v331_v11, %v327_v10  ;;  %v333_v20 = vld [vmem:[#allocation5 + $0x1c8] sm:$0xff] }
  0x7d   : > { %999 = vmatprep.subr.bf16.mxu1 %v998_v57  ;;  %v330_v19 = vld [vmem:[#allocation5 + $0x1b0] sm:$0xff]  ;;  %v337_v21 = vld [vmem:[#allocation5 + $0x1e8] sm:$0xff]  ;;  %v335_v22 = vld [vmem:[#allocation5 + $0x1d8] sm:$0xff]  ;;  %v976_v24 = vpack.c.bf16 %v328_v16, %v324_v15 }
  0x7e   : > { %v339_v23 = vld [vmem:[#allocation5 + $0x1f8] sm:$0xff]  ;;  %v1008_v25 = vpack.c.bf16 %v330_v19, %v326_v17  ;;  %v978_v26 = vpack.c.bf16 %v337_v21, %v333_v20  ;;  %v332_v27 = vld [vmem:[#allocation5 + $0x1c0] sm:$0xff]  ;;  %v334_v29 = vld [vmem:[#allocation5 + $0x1d0] sm:$0xff] }
  0x7f   : > { %969 = vmatpush1.bf16.msra.mxu0 %v968_v63  ;;  %v336_v28 = vld [vmem:[#allocation5 + $0x1e0] sm:$0xff]  ;;  %v1010_v30 = vpack.c.bf16 %v339_v23, %v335_v22  ;;  %v338_v31 = vld [vmem:[#allocation5 + $0x1f0] sm:$0xff]  ;;  %v541_v33 = vld [vmem:[#allocation7 + $0x88] sm:$0xff] }
  0x80   : > { %1001 = vmatpush1.bf16.msra.mxu1 %v1000_v1  ;;  %971 = vmatprep.subr.bf16.mxu0 %v970_v2  ;;  %v540_v32 = vld [vmem:[#allocation7 + $0x80] sm:$0xff]  ;;  %v573_v35 = vld [vmem:[#allocation7 + $0x188] sm:$0xff]  ;;  %v980_v36 = vpack.c.bf16 %v336_v28, %v332_v27  ;;  %v1012_v37 = vpack.c.bf16 %v338_v31, %v334_v29  ;;  %v542_v44 = vld [vmem:[#allocation7 + $0x90] sm:$0xff] }
  0x81   : > { %1003 = vmatprep.subr.bf16.mxu1 %v1002_v6  ;;  %v572_v34 = vld [vmem:[#allocation7 + $0x180] sm:$0xff]  ;;  %v1014_v38 = vpack.c.bf16 %v541_v33, %v540_v32  ;;  %v525_v41 = vld [vmem:[#allocation7 + $0x8] sm:$0xff]  ;;  %v543_v45 = vld [vmem:[#allocation7 + $0x98] sm:$0xff] }
  0x82   : > { %v1046_v39 = vpack.c.bf16 %v573_v35, %v572_v34  ;;  %v524_v40 = vld [vmem:[#allocation7] sm:$0xff]  ;;  %v557_v43 = vld [vmem:[#allocation7 + $0x108] sm:$0xff]  ;;  %v574_v47 = vld [vmem:[#allocation7 + $0x190] sm:$0xff]  ;;  %v1018_v51 = vpack.c.bf16 %v543_v45, %v542_v44 }
  0x83   : > { %973 = vmatpush1.bf16.msra.mxu0 %v972_v12  ;;  %v556_v42 = vld [vmem:[#allocation7 + $0x100] sm:$0xff]  ;;  %v575_v48 = vld [vmem:[#allocation7 + $0x198] sm:$0xff]  ;;  %v1016_v49 = vpack.c.bf16 %v525_v41, %v524_v40  ;;  %v526_v52 = vld [vmem:[#allocation7 + $0x10] sm:$0xff] }
  0x84   : > { %1005 = vmatpush1.bf16.msra.mxu1 %v1004_v13  ;;  %975 = vmatprep.subr.bf16.mxu0 %v974_v14  ;;  %v274_v46 = vld [vmem:[%s1535_s14] sm:$0xff]  ;;  %v1048_v50 = vpack.c.bf16 %v557_v43, %v556_v42  ;;  %v527_v53 = vld [vmem:[#allocation7 + $0x18] sm:$0xff]  ;;  %v1050_v55 = vpack.c.bf16 %v575_v48, %v574_v47  ;;  %v545_v58 = vld [vmem:[#allocation7 + $0xa8] sm:$0xff] }
  0x85   : > { %1007 = vmatprep.subr.bf16.mxu1 %v1006_v18  ;;  %v558_v54 = vld [vmem:[#allocation7 + $0x110] sm:$0xff]  ;;  %v559_v56 = vld [vmem:[#allocation7 + $0x118] sm:$0xff]  ;;  %v544_v57 = vld [vmem:[#allocation7 + $0xa0] sm:$0xff]  ;;  %v1020_v62 = vpack.c.bf16 %v527_v53, %v526_v52 }
  0x86   : > { %v275_v59 = vld [vmem:[%s1535_s14 + $0x8] sm:$0xff]  ;;  %v576_v60 = vld [vmem:[#allocation7 + $0x1a0] sm:$0xff]  ;;  %v1052_v63 = vpack.c.bf16 %v559_v56, %v558_v54  ;;  %v1022_v1 = vpack.c.bf16 %v545_v58, %v544_v57  ;;  %v546_v7 = vld [vmem:[#allocation7 + $0xb0] sm:$0xff] }
  0x87   : > { %977 = vmatpush1.bf16.msra.mxu0 %v976_v24  ;;  %v577_v61 = vld [vmem:[#allocation7 + $0x1a8] sm:$0xff]  ;;  %v528_v2 = vld [vmem:[#allocation7 + $0x20] sm:$0xff]  ;;  %v547_v8 = vld [vmem:[#allocation7 + $0xb8] sm:$0xff] }
  0x88   : > { %1009 = vmatpush1.bf16.msra.mxu1 %v1008_v25  ;;  %979 = vmatprep.subr.bf16.mxu0 %v978_v26  ;;  %v529_v3 = vld [vmem:[#allocation7 + $0x28] sm:$0xff]  ;;  %v560_v4 = vld [vmem:[#allocation7 + $0x120] sm:$0xff]  ;;  %v1054_v5 = vpack.c.bf16 %v577_v61, %v576_v60  ;;  %v578_v9 = vld [vmem:[#allocation7 + $0x1b0] sm:$0xff]  ;;  %v1026_v12 = vpack.c.bf16 %v547_v8, %v546_v7 }
  0x89   : > { %1011 = vmatprep.subr.bf16.mxu1 %v1010_v30  ;;  %v561_v6 = vld [vmem:[#allocation7 + $0x128] sm:$0xff]  ;;  %v579_v10 = vld [vmem:[#allocation7 + $0x1b8] sm:$0xff]  ;;  %v530_v13 = vld [vmem:[#allocation7 + $0x30] sm:$0xff] }
  0x8a   : > { %v1056_v11 = vpack.c.bf16 %v561_v6, %v560_v4  ;;  %v531_v14 = vld [vmem:[#allocation7 + $0x38] sm:$0xff]  ;;  %v562_v15 = vld [vmem:[#allocation7 + $0x130] sm:$0xff]  ;;  %v1058_v16 = vpack.c.bf16 %v579_v10, %v578_v9  ;;  %v548_v18 = vld [vmem:[#allocation7 + $0xc0] sm:$0xff] }
  0x8b   : > { %981 = vmatpush1.bf16.msra.mxu0 %v980_v36  ;;  %v563_v17 = vld [vmem:[#allocation7 + $0x138] sm:$0xff]  ;;  %v549_v19 = vld [vmem:[#allocation7 + $0xc8] sm:$0xff]  ;;  %v580_v20 = vld [vmem:[#allocation7 + $0x1c0] sm:$0xff]  ;;  %v1028_v22 = vpack.c.bf16 %v531_v14, %v530_v13 }
  0x8c   : > { %1013 = vmatpush1.bf16.msra.mxu1 %v1012_v37  ;;  %1015 = vmatprep.subr.bf16.mxu0 %v1014_v38  ;;  %v581_v21 = vld [vmem:[#allocation7 + $0x1c8] sm:$0xff]  ;;  %v1060_v23 = vpack.c.bf16 %v563_v17, %v562_v15  ;;  %v1030_v24 = vpack.c.bf16 %v549_v19, %v548_v18  ;;  %v532_v25 = vld [vmem:[#allocation7 + $0x40] sm:$0xff]  ;;  %v550_v30 = vld [vmem:[#allocation7 + $0xd0] sm:$0xff] }
  0x8d   : > { %1047 = vmatprep.subr.bf16.mxu1 %v1046_v39  ;;  %v533_v26 = vld [vmem:[#allocation7 + $0x48] sm:$0xff]  ;;  %v564_v27 = vld [vmem:[#allocation7 + $0x140] sm:$0xff]  ;;  %v1062_v28 = vpack.c.bf16 %v581_v21, %v580_v20  ;;  %v551_v31 = vld [vmem:[#allocation7 + $0xd8] sm:$0xff] }
  0x8e   : > { %427 = vmatmul.mubr.f32.vlgmr.msra.gmra.mrb[0].mxu0 %v274_v46  ;;  %v565_v29 = vld [vmem:[#allocation7 + $0x148] sm:$0xff]  ;;  %v582_v32 = vld [vmem:[#allocation7 + $0x1d0] sm:$0xff]  ;;  %v583_v33 = vld [vmem:[#allocation7 + $0x1d8] sm:$0xff]  ;;  %v1032_v34 = vpack.c.bf16 %v533_v26, %v532_v25  ;;  %v1034_v36 = vpack.c.bf16 %v551_v31, %v550_v30 }
  0x8f   : > { %504 = vmatmul.mubr.f32.vlgmr.msra.gmra.mrb[0].mxu1 %v274_v46  ;;  %432 = vmatprep.mubr.f32.mxu0 %v1317_v0  ;;  %v1064_v35 = vpack.c.bf16 %v565_v29, %v564_v27  ;;  %v534_v37 = vld [vmem:[#allocation7 + $0x50] sm:$0xff]  ;;  %v535_v38 = vld [vmem:[#allocation7 + $0x58] sm:$0xff]  ;;  %v1066_v40 = vpack.c.bf16 %v583_v33, %v582_v32  ;;  %v552_v42 = vld [vmem:[#allocation7 + $0xe0] sm:$0xff] }
  0x90   : > { %509 = vmatprep.mubr.f32.mxu1 %v1317_v0  ;;  %1017 = vmatpush3.bf16.msra.mxu0 %v1016_v49  ;;  %v1024_v0 = vpack.c.bf16 %v529_v3, %v528_v2  ;;  %v566_v39 = vld [vmem:[#allocation7 + $0x150] sm:$0xff]  ;;  %v567_v41 = vld [vmem:[#allocation7 + $0x158] sm:$0xff]  ;;  %v553_v43 = vld [vmem:[#allocation7 + $0xe8] sm:$0xff]  ;;  %v1036_v46 = vpack.c.bf16 %v535_v38, %v534_v37 }
  0x91   : > { %1049 = vmatpush3.bf16.msra.mxu1 %v1048_v50  ;;  %1019 = vmatprep.subr.bf16.mxu0 %v1018_v51  ;;  %v584_v44 = vld [vmem:[#allocation7 + $0x1e0] sm:$0xff]  ;;  %v585_v45 = vld [vmem:[#allocation7 + $0x1e8] sm:$0xff]  ;;  %v1068_v47 = vpack.c.bf16 %v567_v41, %v566_v39  ;;  %v1038_v48 = vpack.c.bf16 %v553_v43, %v552_v42  ;;  %v554_v56 = vld [vmem:[#allocation7 + $0xf0] sm:$0xff] }
  0x92   : > { %433 = vmatmul.mubr.f32.gmra.mrb[2].mxu0 %v275_v59  ;;  %1051 = vmatprep.subr.bf16.mxu1 %v1050_v55  ;;  %v1070_v49 = vpack.c.bf16 %v585_v45, %v584_v44  ;;  %v536_v50 = vld [vmem:[#allocation7 + $0x60] sm:$0xff]  ;;  %v537_v51 = vld [vmem:[#allocation7 + $0x68] sm:$0xff]  ;;  %v555_v57 = vld [vmem:[#allocation7 + $0xf8] sm:$0xff] }
  0x93   : > { %510 = vmatmul.mubr.f32.gmra.mrb[2].mxu1 %v275_v59  ;;  %v568_v52 = vld [vmem:[#allocation7 + $0x160] sm:$0xff]  ;;  %v1040_v53 = vpack.c.bf16 %v537_v51, %v536_v50  ;;  %v569_v54 = vld [vmem:[#allocation7 + $0x168] sm:$0xff]  ;;  %v586_v58 = vld [vmem:[#allocation7 + $0x1f0] sm:$0xff]  ;;  %v1042_v59 = vpack.c.bf16 %v555_v57, %v554_v56 }
  0x94   : > { %1021 = vmatpush3.bf16.msra.mxu0 %v1020_v62  ;;  %v1072_v55 = vpack.c.bf16 %v569_v54, %v568_v52  ;;  %v587_v60 = vld [vmem:[#allocation7 + $0x1f8] sm:$0xff]  ;;  %v538_v61 = vld [vmem:[#allocation7 + $0x70] sm:$0xff]  ;;  %v340_v8 = vld [vmem:[%s1611_s2] sm:$0xf] }
  0x95   : > { %1053 = vmatpush3.bf16.msra.mxu1 %v1052_v63  ;;  %1023 = vmatprep.subr.bf16.mxu0 %v1022_v1  ;;  %v539_v62 = vld [vmem:[#allocation7 + $0x78] sm:$0xff]  ;;  %v1074_v63 = vpack.c.bf16 %v587_v60, %v586_v58  ;;  %v570_v2 = vld [vmem:[#allocation7 + $0x170] sm:$0xff]  ;;  %v866_v41 = vld [vmem:[%s1613_s4] ss:$0 sm:$0xff] }
  0x96   : > { %1055 = vmatprep.subr.bf16.mxu1 %v1054_v5  ;;  %v1044_v1 = vpack.c.bf16 %v539_v62, %v538_v61  ;;  %v571_v3 = vld [vmem:[#allocation7 + $0x178] sm:$0xff]  ;;  %v342_v5 = vlaneseq }
  0x97   : > { %v1076_v4 = vpack.c.bf16 %v571_v3, %v570_v2 }
  0x98   : > { %1025 = vmatpush3.bf16.msra.mxu0 %v1024_v0  ;;  %v343_v6 = vshrl.u32 %v342_v5, 7 }
  0x99   : > { %1057 = vmatpush3.bf16.msra.mxu1 %v1056_v11  ;;  %1027 = vmatprep.subr.bf16.mxu0 %v1026_v12 }
  0x9a   : > { %1059 = vmatprep.subr.bf16.mxu1 %v1058_v16  ;;  %v344_v7 = vsub.s32 0, %v343_v6  ;;  %v352_v9 = vsub.s32 2, %v343_v6  ;;  %v348_v10 = vsub.s32 1, %v343_v6  ;;  %v356_v0 = vsub.s32 3, %v343_v6 }
  0x9c   : > { %1029 = vmatpush3.bf16.msra.mxu0 %v1028_v22  ;;  %v345_v11 = vrot.slane %v340_v8, %v344_v7  ;;  %v353_v12 = vrot.slane %v340_v8, %v352_v9  ;;  %v349_v13 = vrot.slane %v340_v8, %v348_v10  ;;  %v357_v14 = vrot.slane %v340_v8, %v356_v0 }
  0x9d   : > { %1061 = vmatpush3.bf16.msra.mxu1 %v1060_v23  ;;  %1031 = vmatprep.subr.bf16.mxu0 %v1030_v24 }
  0x9e   : > { %1063 = vmatprep.subr.bf16.mxu1 %v1062_v28 }
  0xa0   : > { %1033 = vmatpush3.bf16.msra.mxu0 %v1032_v34 }
  0xa1   : > { %1065 = vmatpush3.bf16.msra.mxu1 %v1064_v35  ;;  %1035 = vmatprep.subr.bf16.mxu0 %v1034_v36 }
  0xa2   : > { %1067 = vmatprep.subr.bf16.mxu1 %v1066_v40 }
  0xa4   : > { %1037 = vmatpush3.bf16.msra.mxu0 %v1036_v46 }
  0xa5   : > { %1069 = vmatpush3.bf16.msra.mxu1 %v1068_v47  ;;  %1039 = vmatprep.subr.bf16.mxu0 %v1038_v48 }
  0xa6   : > { %1071 = vmatprep.subr.bf16.mxu1 %v1070_v49 }
  0xa8   : > { %1041 = vmatpush3.bf16.msra.mxu0 %v1040_v53 }
  0xa9   : > { %1073 = vmatpush3.bf16.msra.mxu1 %v1072_v55  ;;  %1043 = vmatprep.subr.bf16.mxu0 %v1042_v59 }
  0xaa   : > { %1075 = vmatprep.subr.bf16.mxu1 %v1074_v63 }
  0xac   : > { %1045 = vmatpush3.bf16.msra.mxu0 %v1044_v1 }
  0xad   : > { %1077 = vmatpush3.bf16.msra.mxu1 %v1076_v4 }
 0x161   : > { %v428_v15 = vpop.f32.mrb[0].mxu0 }
 0x162   : > { %v429_v16 = vadd.f32 %v428_v15, %v345_v11  ;;  %v505_v17 = vpop.f32.mrb[0].mxu1  ;;  %v430_v18 = vpop.f32.mrb[1].mxu0 }
 0x163   : > { %v506_v19 = vadd.f32 %v505_v17, %v353_v12  ;;  %v431_v20 = vadd.f32 %v430_v18, %v349_v13  ;;  %v507_v21 = vpop.f32.mrb[1].mxu1 }
 0x164   : > { %v508_v22 = vadd.f32 %v507_v21, %v357_v14  ;;  %v516_v26 = vmax.f32 %v429_v16, 0.0 }
 0x165   : > { %v518_v23 = vmax.f32 %v506_v19, 0.0  ;;  %v517_v24 = vmax.f32 %v431_v20, 0.0  ;;  %v434_v25 = vpop.f32.mrb[2].mxu0 }
 0x166   : > { %v519_v27 = vmax.f32 %v508_v22, 0.0  ;;  %v435_v28 = vadd.f32 %v434_v25, %v345_v11  ;;  %v511_v29 = vpop.f32.mrb[2].mxu1  ;;  %v436_v30 = vpop.f32.mrb[3].mxu0 }
 0x167   : > { %v512_v31 = vadd.f32 %v511_v29, %v353_v12  ;;  %v437_v32 = vadd.f32 %v436_v30, %v349_v13  ;;  %v513_v33 = vpop.f32.mrb[3].mxu1  ;;  %659 = vmatprep.mubr.f32.mxu0 %v517_v24 }
 0x168   : > { %v514_v34 = vadd.f32 %v513_v33, %v357_v14  ;;  %734 = vmatprep.mubr.f32.mxu1 %v519_v27  ;;  %660 = vmatmul.mubr.f32.vlgmr.msra.gmra.mrb[4].mxu0 %v516_v26  ;;  %v520_v37 = vmax.f32 %v435_v28, 0.0 }
 0x169   : > { %v522_v35 = vmax.f32 %v512_v31, 0.0  ;;  %v521_v36 = vmax.f32 %v437_v32, 0.0  ;;  %735 = vmatmul.mubr.f32.vlgmr.msra.gmra.mrb[4].mxu1 %v518_v23 }
 0x16a   : > { %v523_v38 = vmax.f32 %v514_v34, 0.0 }
 0x16b   : > { %664 = vmatprep.mubr.f32.mxu0 %v521_v36 }
 0x16c   : > { %739 = vmatprep.mubr.f32.mxu1 %v523_v38  ;;  %665 = vmatmul.mubr.f32.gmra.mrb[6].mxu0 %v520_v37 }
 0x16d   : > { %740 = vmatmul.mubr.f32.gmra.mrb[6].mxu1 %v522_v35 }
 0x23b   : > { %v906_v39 = vpop.f32.mrb[4].mxu0 }
 0x23c   : > { %v944_v40 = vpop.f32.mrb[4].mxu1  ;;  %v907_v42 = vpop.f32.mrb[5].mxu0 }
 0x23d   : > { %v908_v43 = vadd.f32 %v907_v42, %v906_v39  ;;  %v945_v44 = vpop.f32.mrb[5].mxu1 }
 0x23e   : > { %v946_v45 = vadd.f32 %v945_v44, %v944_v40 }
 0x23f   : > { %v662_v46 = vadd.f32 %v908_v43, %v866_v41  ;;  %v909_v47 = vpop.f32.mrb[6].mxu0 }
 0x240   : > { %v947_v48 = vpop.f32.mrb[6].mxu1  ;;  %v910_v49 = vpop.f32.mrb[7].mxu0 }
 0x241   : > { %v737_v50 = vadd.f32 %v946_v45, %v662_v46  ;;  %v911_v51 = vadd.f32 %v910_v49, %v909_v47  ;;  %v948_v52 = vpop.f32.mrb[7].mxu1 }
 0x242   : > { %v949_v53 = vadd.f32 %v948_v52, %v947_v48 }
 0x243   : > { %745 = vst [vmem:[%s271_s10] sm:$0xff] %v737_v50  ;;  %v667_v54 = vadd.f32 %v911_v51, %v866_v41 }
 0x245   : > { %v742_v55 = vadd.f32 %v949_v53, %v667_v54 }
 0x247   : > { %746 = vst [vmem:[%s271_s10 + $0x8] sm:$0xff] %v742_v55 }
 0x248   : > { %1251 = shalt.err (!%p1248_p2)
}
 0x249   : > { %s1252_s14 = scalar_lea.hbm %s1565_s11, 256  ;;  %s1256_s12 = scalar_lea.hbm %s1614_s5, 512 }
 0x24a   : > { %p1253_p13 = scmp.ne.s32.totalorder %s1565_s11, %s1252_s14  ;;  %p1257_p4 = scmp.lt.u32.totalorder %s1565_s11, %s1614_s5 }
 0x24b   : > { %p1258_p7 = scmp.lt.u32.totalorder %s1256_s12, %s1252_s14  ;;  %p1260_p11 = scmp.lt.u32.totalorder %s1252_s14, %s1565_s11 }
 0x24c   : > { %p1254_p6 = pnand %p1253_p13, %p1628_p0 }
 0x24d   : > { %p1259_p8 = por %p1258_p7, %p1257_p4 }
 0x24e   : > { %p1255_p10 = pneg %p1254_p6 }
 0x24f   : > { %p1261_p1 = por %p1260_p11, %p1259_p8 }
 0x251   : > { %p1262_p3 = pnand %p1261_p1, %p1255_p10 }
 0x253   : > { %1265 = shalt.err (!%p1262_p3)
}
 0x254   : > { %s1319_s15 = smov 128   ;;  %s1320_s9 = smov 8  }
 0x255   : > { %1088 = dma.vmem_to_hbm [thread:$0]  (%p1628_p0), %s1560_s28, 256, %s1565_s11, %s748_s23, %s1319_s15, %s1319_s15, %s1320_s9  }
 0x256 PF: > { %s776_s30 = sand.u32 1, %s1296_s18   ;;  %p1629_p5 = scmp.ne.s32.totalorder %s1619_s25, 0 }
 0x257   : > { %p1630_p9 = scmp.ge.s32.totalorder %s1308_s21, 2  ;;  %s777_s7 = scalar_lea.sflag [#allocation4], %s776_s30 }
 0x259   : > { %p1102_p12 = pnand %p1630_p9, %p1629_p5 }
 0x25b   : > { %1291 = dma.done.wait (!%p1102_p12), %s777_s7, 256  }
 0x25c   : > { %1293 = vsyncadd (!%p1102_p12), %s777_s7, 4294967040  ;;  %p19_p2 = scmp.ge.s32.totalorder %s1464_s16, 4   ;;  %s1631_s18 = smov %s1300_s19 }
 0x25d   : > { %s1632_s19 = smov %s1304_s20  ;;  %s1633_s20 = smov %s1473_s27 }
 0x25e   : > { %s1634_s21 = smov %s1464_s16  ;;  %21 = sbr.rel (!%p19_p2) target bundleno = 6 (0x6), region = 93 }
 0x265   :  { %782 = vsyncpa [#allocation3], 1 }
 0x266   :  { %784 = vsyncpa [#allocation3 + $0x1], 1 }
 0x267   :  { %785 = vsyncpa [#allocation6], 1 }
 0x268   :  { %786 = vsyncpa [#allocation4], 1 }
 0x269   :  { %788 = vsyncpa [#allocation4 + $0x1], 1 }

</bundles_post_ra>
